<compile_context>
chip_gen: v5e
topology: v5e:2x2
jax: 0.10.0
libtpu: 0.0.40
codegen_flags: <defaults>
</compile_context>

<pallas_src>
import jax
import jax.numpy as jnp
from jax.experimental import pallas as pl
from jax.experimental.pallas import tpu as pltpu


def _round_up(x: int, m: int) -> int:
    return ((x + m - 1) // m) * m


def _choose_tile_b(b_pad: int, max_tile_b: int) -> int:
    """Largest multiple-of-16 divisor of b_pad, capped at max_tile_b, with >=2 tiles
    whenever b_pad > 32 so both v7x TensorCores get work."""
    upper = min(max_tile_b, b_pad)
    if b_pad > 32:
        upper = min(upper, b_pad // 2)
    upper = max(16, (upper // 16) * 16)
    for cand in range(upper, 15, -16):
        if b_pad % cand == 0:
            return cand
    return 16


# ----------------------------- fused kernel -----------------------------
def _fused_kernel(x_ref, w1_ref, b1_ref, w2_ref, b2_ref, o_ref):
    # In-kernel bf16 cast of the activation tile (x arrives as f32 from HBM).
    x_bf = x_ref[...].astype(jnp.bfloat16)
    # features = relu(x @ W1 + b1): bf16 MXU inputs, f32 accumulate / bias / relu.
    feats = jnp.dot(x_bf, w1_ref[...], preferred_element_type=jnp.float32)
    feats = jnp.maximum(feats + b1_ref[...], 0.0)
    # All heads at once: out = features @ W2 + b2, W2 is (D, H*C padded to 128).
    out = jnp.dot(feats.astype(jnp.bfloat16), w2_ref[...],
                  preferred_element_type=jnp.float32)
    # Final store in bf16 (o_ref dtype) -> halves the dominant HBM write-back stream.
    o_ref[...] = (out + b2_ref[...]).astype(o_ref.dtype)


def fused_forward(x, w1_bf, b1, w2_bf, b2, *, max_tile_b=1024):
    """x: (B, D_in) f32.  w1_bf: (D_in, D) bf16.  b1: (1, D) f32.
    w2_bf: (D, N_pad) bf16.  b2: (1, N_pad) f32.

    Returns the lane-dense slab (B, N_pad) in bf16 (caller slices the valid H*C columns).
    """
    B, D_in = x.shape
    D = w1_bf.shape[1]
    N_pad = w2_bf.shape[1]

    # Align the batch to 16 rows (only pads when B itself is not 16-aligned), then pick a
    # tile that divides the aligned batch so no further padding is ever materialized.
    B_pad = _round_up(B, 16)
    if B_pad != B:
        x = jnp.pad(x, ((0, B_pad - B), (0, 0)))
    tile_b = _choose_tile_b(B_pad, max_tile_b)
    n_tiles = B_pad // tile_b

    out = pl.pallas_call(
        _fused_kernel,
        out_shape=jax.ShapeDtypeStruct((B_pad, N_pad), jnp.bfloat16),
        grid_spec=pl.GridSpec(
            grid=(n_tiles,),
            in_specs=[
                pl.BlockSpec((tile_b, D_in), lambda i: (i, 0)),   # x tile (f32)
                pl.BlockSpec((D_in, D), lambda i: (0, 0)),        # backbone W (bf16, shared)
                pl.BlockSpec((1, D), lambda i: (0, 0)),           # backbone b (f32)
                pl.BlockSpec((D, N_pad), lambda i: (0, 0)),       # folded head W (bf16, shared)
                pl.BlockSpec((1, N_pad), lambda i: (0, 0)),       # folded head b (f32)
            ],
            out_specs=pl.BlockSpec((tile_b, N_pad), lambda i: (i, 0)),
        ),
        compiler_params=pltpu.CompilerParams(
            dimension_semantics=("parallel",)),   # batch tiles split across TCs on v7x
    )(x, w1_bf, b1.astype(jnp.float32), w2_bf, b2.astype(jnp.float32))

    return out[:B]


# ------------------------------ full model ------------------------------
def pack_head_params(head_w, head_b):
    """head_w: (H, D, C), head_b: (H, C) -> lane-dense bf16 (D, N_pad), f32 (1, N_pad),
    N_pad = ceil128(H*C).  Column h*C + c corresponds to head h, class c."""
    H, D, C = head_w.shape
    n = H * C
    n_pad = _round_up(n, 128)   # minimum lane-dense width; don't widen (v5e MXU trade-off)
    w2 = jnp.transpose(head_w, (1, 0, 2)).reshape(D, n)
    b2 = head_b.reshape(1, n)
    if n_pad != n:
        w2 = jnp.pad(w2, ((0, 0), (0, n_pad - n)))
        b2 = jnp.pad(b2, ((0, 0), (0, n_pad - n)))
    return w2.astype(jnp.bfloat16), b2.astype(jnp.float32)


def clustering_model_forward(x, params):
    """Mirrors ClusteringModel.forward: features = backbone(x); out = [head(features) ...].

    One fused Pallas kernel; the per-head list is unpacked once at the framework boundary.
    """
    H, _, C = params["head_w"].shape
    w2, b2 = pack_head_params(params["head_w"], params["head_b"])
    w1 = params["backbone_w"].astype(jnp.bfloat16)   # persistent bf16 weights
    slab = fused_forward(x, w1, params["backbone_b"], w2, b2)   # (B, N_pad) bf16
    B = x.shape[0]
    stacked = slab[:, : H * C].reshape(B, H, C).astype(jnp.float32)   # (B, H, C)
    return [stacked[:, h, :] for h in range(H)]                       # nn.ModuleList-style list


def init_params(key, d_in, backbone_dim, num_classes, num_heads):
    k1, k2, k3 = jax.random.split(key, 3)
    backbone_w = jax.random.normal(k1, (d_in, backbone_dim), jnp.float32) / jnp.sqrt(d_in)
    backbone_b = jnp.zeros((1, backbone_dim), jnp.float32)
    head_w = (jax.random.normal(k2, (num_heads, backbone_dim, num_classes), jnp.float32)
              / jnp.sqrt(backbone_dim))
    head_b = 0.01 * jax.random.normal(k3, (num_heads, num_classes), jnp.float32)
    return {
        "backbone_w": backbone_w,
        "backbone_b": backbone_b,
        "head_w": head_w,
        "head_b": head_b,
    }


if __name__ == "__main__":
    B = 8            # batch
    D_IN = 64        # raw input feature dim fed to the (stand-in) backbone
    BACKBONE_DIM = 512
    NUM_CLASSES = 10
    NUM_HEADS = 3

    key = jax.random.PRNGKey(0)
    kx, kp = jax.random.split(key)
    x = jax.random.normal(kx, (B, D_IN), jnp.float32)
    params = init_params(kp, D_IN, BACKBONE_DIM, NUM_CLASSES, NUM_HEADS)

    outs = clustering_model_forward(x, params)
    outs = [jax.block_until_ready(o) for o in outs]

    # Reference in plain JAX, using the same bf16 quantization the kernel uses
    # (bf16 matmul inputs, f32 accumulate, bf16 final store).
    def q(a):
        return a.astype(jnp.bfloat16).astype(jnp.float32)

    feats_ref = jnp.maximum(q(x) @ q(params["backbone_w"]) + params["backbone_b"], 0.0)
    feats_ref_q = q(feats_ref)
    ok = True
    for h in range(NUM_HEADS):
        ref = feats_ref_q @ q(params["head_w"][h]) + params["head_b"][h]
        ref = q(ref)   # kernel stores its output slab in bf16
        assert outs[h].shape == (B, NUM_CLASSES)
        ok = ok and bool(jnp.allclose(outs[h], ref, atol=2e-2, rtol=2e-2))
    assert ok

    print("KERNEL_OK")
</pallas_src>

<mosaic_0001>
module attributes {stable_mosaic.version = 11 : i64} {
  func.func @_fused_kernel(%arg0: i32, %arg1: memref<16x64xf32, #tpu.memory_space<vmem>>, %arg2: memref<64x512xbf16, #tpu.memory_space<vmem>>, %arg3: memref<1x512xf32, #tpu.memory_space<vmem>>, %arg4: memref<512x128xbf16, #tpu.memory_space<vmem>>, %arg5: memref<1x128xf32, #tpu.memory_space<vmem>>, %arg6: memref<16x128xbf16, #tpu.memory_space<vmem>>) attributes {dimension_semantics = [#tpu.dimension_semantics<parallel>], iteration_bounds = array<i64: 1>, scalar_prefetch = 0 : i64, scratch_operands = 0 : i64, tpu.core_type = #tpu.core_type<tc>, window_params = [{transform_indices = @transform_0, window_bounds = array<i64: 16, 64>}, {pipeline_mode = #tpu.pipeline_mode<synchronous>, transform_indices = @transform_1, window_bounds = array<i64: 64, 512>}, {pipeline_mode = #tpu.pipeline_mode<synchronous>, transform_indices = @transform_2, window_bounds = array<i64: 1, 512>}, {pipeline_mode = #tpu.pipeline_mode<synchronous>, transform_indices = @transform_3, window_bounds = array<i64: 512, 128>}, {pipeline_mode = #tpu.pipeline_mode<synchronous>, transform_indices = @transform_4, window_bounds = array<i64: 1, 128>}, {transform_indices = @transform_5, window_bounds = array<i64: 16, 128>}]} {
    %c0 = arith.constant 0 : index
    %c0_0 = arith.constant 0 : index
    %0 = vector.load %arg1[%c0, %c0_0] : memref<16x64xf32, #tpu.memory_space<vmem>>, vector<16x64xf32>
    %1 = arith.truncf %0 : vector<16x64xf32> to vector<16x64xbf16>
    %c0_1 = arith.constant 0 : index
    %c0_2 = arith.constant 0 : index
    %2 = vector.load %arg2[%c0_1, %c0_2] : memref<64x512xbf16, #tpu.memory_space<vmem>>, vector<64x512xbf16>
    %cst = arith.constant dense<0.000000e+00> : vector<16x512xf32>
    %3 = tpu.matmul %1, %2, %cst {dimension_numbers = #tpu.dot_dimension_numbers<[1], [0], [0], [1], [0, 0, 1, 1], [], []>} : vector<16x64xbf16>, vector<64x512xbf16>, vector<16x512xf32> -> vector<16x512xf32>
    %c0_3 = arith.constant 0 : index
    %c0_4 = arith.constant 0 : index
    %4 = vector.load %arg3[%c0_3, %c0_4] : memref<1x512xf32, #tpu.memory_space<vmem>>, vector<1x512xf32>
    %5 = vector.broadcast %4 : vector<1x512xf32> to vector<16x512xf32>
    %6 = arith.addf %3, %5 : vector<16x512xf32>
    %cst_5 = arith.constant 0.000000e+00 : f32
    %7 = vector.broadcast %cst_5 : f32 to vector<16x512xf32>
    %8 = arith.maximumf %6, %7 : vector<16x512xf32>
    %9 = arith.truncf %8 : vector<16x512xf32> to vector<16x512xbf16>
    %c0_6 = arith.constant 0 : index
    %c0_7 = arith.constant 0 : index
    %10 = vector.load %arg4[%c0_6, %c0_7] : memref<512x128xbf16, #tpu.memory_space<vmem>>, vector<512x128xbf16>
    %cst_8 = arith.constant dense<0.000000e+00> : vector<16x128xf32>
    %11 = tpu.matmul %9, %10, %cst_8 {dimension_numbers = #tpu.dot_dimension_numbers<[1], [0], [0], [1], [0, 0, 1, 1], [], []>} : vector<16x512xbf16>, vector<512x128xbf16>, vector<16x128xf32> -> vector<16x128xf32>
    %c0_9 = arith.constant 0 : index
    %c0_10 = arith.constant 0 : index
    %12 = vector.load %arg5[%c0_9, %c0_10] : memref<1x128xf32, #tpu.memory_space<vmem>>, vector<1x128xf32>
    %13 = vector.broadcast %12 : vector<1x128xf32> to vector<16x128xf32>
    %14 = arith.addf %11, %13 : vector<16x128xf32>
    %15 = arith.truncf %14 : vector<16x128xf32> to vector<16x128xbf16>
    %c0_11 = arith.constant 0 : index
    %c0_12 = arith.constant 0 : index
    %16 = vector.load %arg6[%c0_11, %c0_12] : memref<16x128xbf16, #tpu.memory_space<vmem>>, vector<16x128xbf16>
    tpu.vector_store %arg6[%c0_11, %c0_12], %15 {strides = array<i32>} : memref<16x128xbf16, #tpu.memory_space<vmem>>, vector<16x128xbf16>,
    return
  }
  func.func @transform_0(%arg0: i32) -> (i32, i32) {
    %c0_i32 = arith.constant 0 : i32
    %c0_i32_0 = arith.constant 0 : i32
    return %arg0, %c0_i32 : i32, i32
  }
  func.func @transform_1(%arg0: i32) -> (i32, i32) {
    %c0_i32 = arith.constant 0 : i32
    %c0_i32_0 = arith.constant 0 : i32
    %c0_i32_1 = arith.constant 0 : i32
    return %c0_i32, %c0_i32_0 : i32, i32
  }
  func.func @transform_2(%arg0: i32) -> (i32, i32) {
    %c0_i32 = arith.constant 0 : i32
    %c0_i32_0 = arith.constant 0 : i32
    %c0_i32_1 = arith.constant 0 : i32
    return %c0_i32, %c0_i32_0 : i32, i32
  }
  func.func @transform_3(%arg0: i32) -> (i32, i32) {
    %c0_i32 = arith.constant 0 : i32
    %c0_i32_0 = arith.constant 0 : i32
    %c0_i32_1 = arith.constant 0 : i32
    return %c0_i32, %c0_i32_0 : i32, i32
  }
  func.func @transform_4(%arg0: i32) -> (i32, i32) {
    %c0_i32 = arith.constant 0 : i32
    %c0_i32_0 = arith.constant 0 : i32
    %c0_i32_1 = arith.constant 0 : i32
    return %c0_i32, %c0_i32_0 : i32, i32
  }
  func.func @transform_5(%arg0: i32) -> (i32, i32) {
    %c0_i32 = arith.constant 0 : i32
    %c0_i32_0 = arith.constant 0 : i32
    return %arg0, %c0_i32 : i32, i32
  }
}

</mosaic_0001>

<bundles_post_ra>
// kernel: tpu_custom_call.1
= control target key start
LH: loop header
LB: loop body
LE: loop exit
PB: predicated region body
PF: predicated region fallthrough
CT: control target
= control target key end

     0   :  { %10 = vsyncpa [#allocation3], 0  ;;  %s1059_s0 = inlined_call_operand.hbm [shape: f32[16,64], index: 0, kind: input, shape index: {}]   ;;  %s1060_s1 = inlined_call_operand.hbm [shape: bf16[64,512], index: 1, kind: input, shape index: {}]   ;;  %s1061_s2 = inlined_call_operand.hbm [shape: f32[1,512], index: 2, kind: input, shape index: {}]   ;;  %s1062_s3 = inlined_call_operand.hbm [shape: bf16[512,128], index: 3, kind: input, shape index: {}]   ;;  %s1063_s4 = inlined_call_operand.vmem [shape: f32[1,128], index: 4, kind: input, shape index: {}]   ;;  %s1064_s5 = inlined_call_operand.hbm [shape: bf16[16,128], index: 5, kind: output, shape index: {}]  }
   0x1   :  { %11 = vsyncpa [#allocation6], 0 }
   0x2   :  { %12 = vsyncpa [#allocation9], 0  ;;  %s31_s20 = sshll.u32 %s1060_s1, 4  ;;  %s32_s20 = int_to_ptr.hbm [resolvable:$true] %s31_s20 }
   0x3   :  { %13 = vsyncpa [#allocation4], 0  ;;  %s994_s21 = smov [#allocation5]   ;;  %s18_s25 = sshll.u32 %s1059_s0, 4  ;;  %s19_s25 = int_to_ptr.hbm [resolvable:$true] %s18_s25 }
   0x4   :  { %s33_s22 = sshll.u32 %s994_s21, 4  ;;  %s995_s26 = smov 256   ;;  %s34_s22 = int_to_ptr.vmem [resolvable:$true] %s33_s22 }
   0x5   :  { %s996_s27 = smov 16   ;;  %s997_s28 = smov [#allocation2]  }
   0x6   :  { %39 = dma.hbm_to_vmem [thread:$0]  %s32_s20, 2048, %s34_s22, [#allocation6], %s995_s26, %s995_s26, %s996_s27  }
   0x7   :  { %s20_s29 = sshll.u32 %s997_s28, 4  ;;  %s998_s30 = smov 128   ;;  %s21_s29 = int_to_ptr.vmem [resolvable:$true] %s20_s29 }
   0x8   :  { %s999_s6 = smov 8   ;;  %s45_s8 = sshll.u32 %s1061_s2, 4  ;;  %s46_s8 = int_to_ptr.hbm [resolvable:$true] %s45_s8 }
   0x9   :  { %26 = dma.hbm_to_vmem [thread:$0]  %s19_s25, 256, %s21_s29, [#allocation3], %s998_s30, %s998_s30, %s999_s6  }
   0xa   :  { %s1000_s9 = smov [#allocation7]   ;;  %s55_s12 = sshll.u32 %s1062_s3, 4  ;;  %s56_s12 = int_to_ptr.hbm [resolvable:$true] %s55_s12 }
   0xb   :  { %s47_s10 = sshll.u32 %s1000_s9, 4  ;;  %s1001_s13 = smov [#allocation8]   ;;  %s48_s10 = int_to_ptr.vmem [resolvable:$true] %s47_s10 }
   0xc   :  { %50 = dma.hbm_to_vmem [thread:$0]  %s46_s8, 64, %s48_s10, [#allocation6]  }
   0xd   :  { %s57_s14 = sshll.u32 %s1001_s13, 4  ;;  %s1002_s15 = smov 64   ;;  %s58_s14 = int_to_ptr.vmem [resolvable:$true] %s57_s14 }
   0xe   :  { %s1003_s16 = smov 4  }
   0xf   :  { %63 = dma.hbm_to_vmem [thread:$0]  %s56_s12, 4096, %s58_s14, [#allocation9], %s1002_s15, %s1002_s15, %s1003_s16  }
  0x10   :  { %986 = dma.done.wait [#allocation3], 256  }
  0x11   :  { %987 = vsyncadd [#allocation3], 4294967040 }
  0x12   :  { %988 = dma.done.wait [#allocation6], 2112  }
  0x13   :  { %989 = vsyncadd [#allocation6], 4294965184 }
  0x14   :  { %990 = dma.done.wait [#allocation9], 4096  }
  0x15   :  { %991 = vsyncadd [#allocation9], 4294963200  ;;  %v655_v0 = vld [vmem:[#allocation5 + $0x60] sm:$0xf]  ;;  %v815_v1 = vld [vmem:[#allocation5 + $0x6c] sm:$0xf0] }
  0x16   :  { %v813_v2 = vld [vmem:[#allocation5 + $0x64] sm:$0xf]  ;;  %v656_v3 = vor.u32 %v815_v1, %v655_v0  ;;  %v657_v4 = vld [vmem:[#allocation5 + $0x70] sm:$0xf0]  ;;  %v663_v5 = vld [vmem:[#allocation5 + $0x68] sm:$0xf] }
  0x17   :  { %v816_v6 = vld [vmem:[#allocation5 + $0x74] sm:$0xf0]  ;;  %v660_v7 = vor.u32 %v813_v2, %v657_v4  ;;  %v814_v9 = vld [vmem:[#allocation5 + $0x6c] sm:$0xf]  ;;  %v665_v10 = vld [vmem:[#allocation5 + $0x78] sm:$0xf0] }
  0x18   :  { %v664_v8 = vor.u32 %v816_v6, %v663_v5  ;;  %v639_v11 = vld [vmem:[#allocation5 + $0x40] sm:$0xf]  ;;  %200 = vmatpush.bf16.msra.mxu0 %v656_v3  ;;  %v668_v12 = vor.u32 %v814_v9, %v665_v10  ;;  %v811_v13 = vld [vmem:[#allocation5 + $0x4c] sm:$0xf0]  ;;  %v809_v14 = vld [vmem:[#allocation5 + $0x44] sm:$0xf] }
  0x19   :  { %v641_v15 = vld [vmem:[#allocation5 + $0x50] sm:$0xf0]  ;;  %214 = vmatpush.bf16.msra.mxu1 %v660_v7  ;;  %v640_v16 = vor.u32 %v811_v13, %v639_v11  ;;  %v647_v18 = vld [vmem:[#allocation5 + $0x48] sm:$0xf]  ;;  %v812_v19 = vld [vmem:[#allocation5 + $0x54] sm:$0xf0] }
  0x1a   :  { %228 = vmatpush.bf16.msra.mxu2 %v664_v8  ;;  %v644_v17 = vor.u32 %v809_v14, %v641_v15  ;;  %v810_v20 = vld [vmem:[#allocation5 + $0x4c] sm:$0xf]  ;;  %242 = vmatpush.bf16.msra.mxu3 %v668_v12  ;;  %v648_v21 = vor.u32 %v812_v19, %v647_v18  ;;  %v649_v22 = vld [vmem:[#allocation5 + $0x58] sm:$0xf0]  ;;  %v623_v23 = vld [vmem:[#allocation5 + $0x20] sm:$0xf] }
  0x1b   :  { %v807_v24 = vld [vmem:[#allocation5 + $0x2c] sm:$0xf0]  ;;  %v652_v25 = vor.u32 %v810_v20, %v649_v22  ;;  %v805_v26 = vld [vmem:[#allocation5 + $0x24] sm:$0xf]  ;;  %v625_v27 = vld [vmem:[#allocation5 + $0x30] sm:$0xf0] }
  0x1c   :  { %v631_v28 = vld [vmem:[#allocation5 + $0x28] sm:$0xf]  ;;  %201 = vmatpush.bf16.msra.mxu0 %v640_v16  ;;  %v624_v29 = vor.u32 %v807_v24, %v623_v23  ;;  %v808_v30 = vld [vmem:[#allocation5 + $0x34] sm:$0xf0]  ;;  %v806_v31 = vld [vmem:[#allocation5 + $0x2c] sm:$0xf]  ;;  %v628_v33 = vor.u32 %v805_v26, %v625_v27 }
  0x1d   :  { %v633_v32 = vld [vmem:[#allocation5 + $0x38] sm:$0xf0]  ;;  %215 = vmatpush.bf16.msra.mxu1 %v644_v17  ;;  %v632_v34 = vor.u32 %v808_v30, %v631_v28  ;;  %v607_v35 = vld [vmem:[#allocation5] sm:$0xf]  ;;  %v803_v36 = vld [vmem:[#allocation5 + $0xc] sm:$0xf0] }
  0x1e   :  { %229 = vmatpush.bf16.msra.mxu2 %v648_v21  ;;  %v801_v37 = vld [vmem:[#allocation5 + $0x4] sm:$0xf]  ;;  %243 = vmatpush.bf16.msra.mxu3 %v652_v25  ;;  %v636_v38 = vor.u32 %v806_v31, %v633_v32  ;;  %v609_v39 = vld [vmem:[#allocation5 + $0x10] sm:$0xf0]  ;;  %v615_v40 = vld [vmem:[#allocation5 + $0x8] sm:$0xf]  ;;  %v608_v44 = vor.u32 %v803_v36, %v607_v35 }
  0x1f   :  { %v804_v41 = vld [vmem:[#allocation5 + $0x14] sm:$0xf0]  ;;  %v802_v42 = vld [vmem:[#allocation5 + $0xc] sm:$0xf]  ;;  %v617_v43 = vld [vmem:[#allocation5 + $0x18] sm:$0xf0]  ;;  %v612_v47 = vor.u32 %v801_v37, %v609_v39 }
  0x20   :  { %202 = vmatpush.bf16.msra.mxu0 %v624_v29  ;;  %v83_v45 = vld [vmem:[#allocation2] sm:$0xff]  ;;  %v84_v46 = vld [vmem:[#allocation2 + $0x8] sm:$0xff]  ;;  %v616_v48 = vor.u32 %v804_v41, %v615_v40  ;;  %v620_v49 = vor.u32 %v802_v42, %v617_v43  ;;  %vm192_vm0 = vcmask 523264   ;;  %v821_v62 = vld [vmem:[#allocation8 + $0x20] sm:$0xff]  ;;  %s1004_s17 = smov [#allocation10]   ;;  %s590_s21 = sshll.u32 %s1064_s5, 4  ;;  %s591_s21 = int_to_ptr.hbm [resolvable:$true] %s590_s21 }
  0x21   :  { %216 = vmatpush.bf16.msra.mxu1 %v628_v33  ;;  %v824_v50 = vld [vmem:[#allocation8 + $0x38] sm:$0xff]  ;;  %v85_v51 = vpack.c.bf16 %v84_v46, %v83_v45  ;;  %v823_v54 = vld [vmem:[#allocation8 + $0x30] sm:$0xff]  ;;  %v822_v58 = vld [vmem:[#allocation8 + $0x28] sm:$0xff]  ;;  %s588_s18 = sshll.u32 %s1004_s17, 4  ;;  %s589_s18 = int_to_ptr.vmem [resolvable:$true] %s588_s18 }
  0x22   :  { %230 = vmatpush.bf16.msra.mxu2 %v632_v34  ;;  %244 = vmatpush.bf16.msra.mxu3 %v636_v38  ;;  %v832_v52 = vld [vmem:[#allocation8 + $0x78] sm:$0xff]  ;;  %v831_v56 = vld [vmem:[#allocation8 + $0x70] sm:$0xff]  ;;  %v830_v60 = vld [vmem:[#allocation8 + $0x68] sm:$0xff] }
  0x23   :  { %v840_v53 = vld [vmem:[#allocation8 + $0xb8] sm:$0xff]  ;;  %v839_v57 = vld [vmem:[#allocation8 + $0xb0] sm:$0xff]  ;;  %v838_v61 = vld [vmem:[#allocation8 + $0xa8] sm:$0xff] }
  0x24   :  { %203 = vmatpush.bf16.msra.mxu0 %v608_v44  ;;  %v848_v55 = vld [vmem:[#allocation8 + $0xf8] sm:$0xff]  ;;  %v847_v59 = vld [vmem:[#allocation8 + $0xf0] sm:$0xff]  ;;  %v846_v63 = vld [vmem:[#allocation8 + $0xe8] sm:$0xff] }
  0x25   :  { %217 = vmatpush.bf16.msra.mxu1 %v612_v47  ;;  %v829_v0 = vld [vmem:[#allocation8 + $0x60] sm:$0xff]  ;;  %v820_v1 = vld [vmem:[#allocation8 + $0x18] sm:$0xff]  ;;  %v819_v5 = vld [vmem:[#allocation8 + $0x10] sm:$0xff] }
  0x26   :  { %231 = vmatpush.bf16.msra.mxu2 %v616_v48  ;;  %245 = vmatpush.bf16.msra.mxu3 %v620_v49  ;;  %v828_v2 = vld [vmem:[#allocation8 + $0x58] sm:$0xff]  ;;  %v837_v3 = vld [vmem:[#allocation8 + $0xa0] sm:$0xff]  ;;  %v827_v6 = vld [vmem:[#allocation8 + $0x50] sm:$0xff] }
  0x27   :  { %669 = vmatmul.msk.bf16.vlgmr.msra.gmra.mxu0 %vm192_vm0, %v85_v51  ;;  %v845_v4 = vld [vmem:[#allocation8 + $0xe0] sm:$0xff]  ;;  %v836_v7 = vld [vmem:[#allocation8 + $0x98] sm:$0xff]  ;;  %v818_v9 = vld [vmem:[#allocation8 + $0x8] sm:$0xff] }
  0x28   :  { %524 = vmatpush.bf16.msrb.mxu0 %v824_v50  ;;  %670 = vmatmul.msk.bf16.vlgmr.msra.gmra.mxu1 %vm192_vm0, %v85_v51  ;;  %v844_v8 = vld [vmem:[#allocation8 + $0xd8] sm:$0xff]  ;;  %v826_v10 = vld [vmem:[#allocation8 + $0x48] sm:$0xff]  ;;  %v835_v11 = vld [vmem:[#allocation8 + $0x90] sm:$0xff] }
  0x29   :  { %538 = vmatpush.bf16.msrb.mxu1 %v832_v52  ;;  %671 = vmatmul.msk.bf16.vlgmr.msra.gmra.mxu2 %vm192_vm0, %v85_v51  ;;  %v843_v12 = vld [vmem:[#allocation8 + $0xd0] sm:$0xff]  ;;  %v817_v13 = vld [vmem:[#allocation8] sm:$0xff]  ;;  %v834_v15 = vld [vmem:[#allocation8 + $0x88] sm:$0xff] }
  0x2a   :  { %672 = vmatmul.msk.bf16.vlgmr.msra.gmra.mxu3 %vm192_vm0, %v85_v51  ;;  %552 = vmatpush.bf16.msrb.mxu2 %v840_v53  ;;  %v825_v14 = vld [vmem:[#allocation8 + $0x40] sm:$0xff]  ;;  %v842_v16 = vld [vmem:[#allocation8 + $0xc8] sm:$0xff]  ;;  %v102_v19 = vld [vmem:[#allocation7] sm:$0xf] }
  0x2b   :  { %566 = vmatpush.bf16.msrb.mxu3 %v848_v55  ;;  %v833_v17 = vld [vmem:[#allocation8 + $0x80] sm:$0xff]  ;;  %v104_v21 = vperm.slane %v102_v19, 0  ;;  %v105_v23 = vperm.slane %v102_v19, 1  ;;  %v106_v33 = vperm.slane %v102_v19, 2  ;;  %v107_v35 = vperm.slane %v102_v19, 3 }
  0x2c   :  { %525 = vmatpush.bf16.msrb.mxu0 %v823_v54  ;;  %v841_v18 = vld [vmem:[#allocation8 + $0xc0] sm:$0xff]  ;;  %v865_v54 = vld [vmem:[%s1063_s4] ss:$0 sm:$0xff] }
  0x2d   :  { %539 = vmatpush.bf16.msrb.mxu1 %v831_v56 }
  0x2e   :  { %553 = vmatpush.bf16.msrb.mxu2 %v839_v57 }
  0x2f   :  { %567 = vmatpush.bf16.msrb.mxu3 %v847_v59 }
  0x30   :  { %526 = vmatpush.bf16.msrb.mxu0 %v822_v58 }
  0x31   :  { %540 = vmatpush.bf16.msrb.mxu1 %v830_v60 }
  0x32   :  { %554 = vmatpush.bf16.msrb.mxu2 %v838_v61 }
  0x33   :  { %568 = vmatpush.bf16.msrb.mxu3 %v846_v63 }
  0x34   :  { %527 = vmatpush.bf16.msrb.mxu0 %v821_v62 }
  0x35   :  { %541 = vmatpush.bf16.msrb.mxu1 %v829_v0 }
  0x36   :  { %555 = vmatpush.bf16.msrb.mxu2 %v837_v3 }
  0x37   :  { %569 = vmatpush.bf16.msrb.mxu3 %v845_v4 }
  0x38   :  { %528 = vmatpush.bf16.msrb.mxu0 %v820_v1 }
  0x39   :  { %542 = vmatpush.bf16.msrb.mxu1 %v828_v2 }
  0x3a   :  { %556 = vmatpush.bf16.msrb.mxu2 %v836_v7 }
  0x3b   :  { %570 = vmatpush.bf16.msrb.mxu3 %v844_v8 }
  0x3c   :  { %529 = vmatpush.bf16.msrb.mxu0 %v819_v5 }
  0x3d   :  { %543 = vmatpush.bf16.msrb.mxu1 %v827_v6 }
  0x3e   :  { %557 = vmatpush.bf16.msrb.mxu2 %v835_v11 }
  0x3f   :  { %571 = vmatpush.bf16.msrb.mxu3 %v843_v12 }
  0x40   :  { %530 = vmatpush.bf16.msrb.mxu0 %v818_v9 }
  0x41   :  { %544 = vmatpush.bf16.msrb.mxu1 %v826_v10 }
  0x42   :  { %558 = vmatpush.bf16.msrb.mxu2 %v834_v15 }
  0x43   :  { %572 = vmatpush.bf16.msrb.mxu3 %v842_v16 }
  0x44   :  { %531 = vmatpush.bf16.msrb.mxu0 %v817_v13 }
  0x45   :  { %545 = vmatpush.bf16.msrb.mxu1 %v825_v14 }
  0x46   :  { %559 = vmatpush.bf16.msrb.mxu2 %v833_v17 }
  0x47   :  { %573 = vmatpush.bf16.msrb.mxu3 %v841_v18 }
  0xa4   :  { %v205_v20 = vpop.f32.mrf.mxu0 }
  0xa5   :  { %v219_v22 = vpop.f32.mrf.mxu1  ;;  %v206_v24 = vadd.f32 %v205_v20, %v104_v21 }
  0xa6   :  { %v220_v25 = vadd.f32 %v219_v22, %v105_v23 }
  0xa7   :  { %v252_v29 = vmax.f32 %v206_v24, 0.0 }
  0xa8   :  { %v253_v32 = vmax.f32 %v220_v25, 0.0 }
  0xac   :  { %v233_v26 = vpop.f32.mrf.mxu2  ;;  %v207_v28 = vpop.f32.mrf.mxu0 }
  0xad   :  { %v247_v27 = vpop.f32.mrf.mxu3  ;;  %v208_v30 = vadd.f32 %v207_v28, %v104_v21  ;;  %v221_v31 = vpop.f32.mrf.mxu1  ;;  %v234_v39 = vadd.f32 %v233_v26, %v106_v33 }
  0xae   :  { %v222_v34 = vadd.f32 %v221_v31, %v105_v23  ;;  %v248_v41 = vadd.f32 %v247_v27, %v107_v35 }
  0xaf   :  { %v256_v36 = vmax.f32 %v208_v30, 0.0  ;;  %v254_v46 = vmax.f32 %v234_v39, 0.0 }
  0xb0   :  { %v257_v37 = vmax.f32 %v222_v34, 0.0  ;;  %v255_v48 = vmax.f32 %v248_v41, 0.0 }
  0xb1   :  { %v260_v38 = vpack.c.bf16 %v256_v36, %v252_v29 }
  0xb2   :  { %v261_v40 = vpack.c.bf16 %v257_v37, %v253_v32 }
  0xb3   :  { %532 = vmatmul.bf16.vlgmr.msrb.gmra.mxu0 %v260_v38 }
  0xb4   :  { %v235_v42 = vpop.f32.mrf.mxu2  ;;  %546 = vmatmul.bf16.vlgmr.msrb.gmra.mxu1 %v261_v40 }
  0xb5   :  { %v236_v43 = vadd.f32 %v235_v42, %v106_v33  ;;  %v249_v44 = vpop.f32.mrf.mxu3 }
  0xb6   :  { %v250_v45 = vadd.f32 %v249_v44, %v107_v35 }
  0xb7   :  { %v258_v47 = vmax.f32 %v236_v43, 0.0 }
  0xb8   :  { %v259_v49 = vmax.f32 %v250_v45, 0.0 }
  0xb9   :  { %v262_v50 = vpack.c.bf16 %v258_v47, %v254_v46 }
  0xba   :  { %v263_v51 = vpack.c.bf16 %v259_v49, %v255_v48 }
  0xbb   :  { %560 = vmatmul.bf16.vlgmr.msrb.gmra.mxu2 %v262_v50 }
  0xbc   :  { %574 = vmatmul.bf16.vlgmr.msrb.gmra.mxu3 %v263_v51 }
 0x130   :  { %v533_v52 = vpop.f32.mrf.mxu0 }
 0x131   :  { %v547_v53 = vpop.f32.mrf.mxu1  ;;  %v534_v57 = vadd.f32 %v865_v54, %v533_v52 }
 0x133   :  { %v548_v60 = vadd.f32 %v547_v53, %v534_v57 }
 0x138   :  { %v535_v55 = vpop.f32.mrf.mxu0 }
 0x139   :  { %v536_v59 = vadd.f32 %v865_v54, %v535_v55  ;;  %v549_v61 = vpop.f32.mrf.mxu1 }
 0x13b   :  { %v550_v62 = vadd.f32 %v549_v61, %v536_v59 }
 0x13e   :  { %v561_v56 = vpop.f32.mrf.mxu2 }
 0x13f   :  { %v575_v58 = vpop.f32.mrf.mxu3  ;;  %v562_v63 = vadd.f32 %v561_v56, %v548_v60 }
 0x141   :  { %v576_v3 = vadd.f32 %v575_v58, %v562_v63 }
 0x146   :  { %v563_v0 = vpop.f32.mrf.mxu2 }
 0x147   :  { %v564_v1 = vadd.f32 %v563_v0, %v550_v62  ;;  %v577_v2 = vpop.f32.mrf.mxu3 }
 0x149   :  { %v578_v4 = vadd.f32 %v577_v2, %v564_v1 }
 0x14b   :  { %v852_v5 = vpack.c.bf16 %v578_v4, %v576_v3 }
 0x14d   :  { %853 = vst [vmem:[#allocation10] sm:$0xff] %v852_v5  }
 0x14e   :  { %596 = dma.vmem_to_hbm [thread:$0]  %s589_s18, 128, %s591_s21, [#allocation4], %s1002_s15, %s1002_s15, %s1003_s16  }
 0x14f   :  { %992 = dma.done.wait [#allocation4], 128  }
 0x150   :  { %993 = vsyncadd [#allocation4], 4294967168 }
 0x151   :  { %601 = vsyncpa [#allocation3], 1 }
 0x152   :  { %602 = vsyncpa [#allocation6], 1 }
 0x153   :  { %603 = vsyncpa [#allocation9], 1 }
 0x154   :  { %604 = vsyncpa [#allocation4], 1 }

</bundles_post_ra>
